<compile_context>
chip_gen: v7x
topology: tpu7x:2x2x1
jax: 0.10.0
libtpu: 0.0.40
codegen_flags: <defaults>
</compile_context>

<pallas_src>
import jax
import jax.numpy as jnp
import numpy as np
from jax.experimental import pallas as pl
from jax.experimental.pallas import tpu as pltpu


# ----------------------------------------------------------------------------
# Fused multi-layer LSTM + Linear(H,1) head kernel (one time chunk per grid
# step; recurrent h/c carries persist in VMEM scratch across grid steps).
# ----------------------------------------------------------------------------
def _make_fused_kernel(num_layers, Tc, Bp, H):
    H4 = 4 * H

    def kernel(*refs):
        x_ref = refs[0]
        layer_refs = refs[1:1 + 3 * num_layers]          # (wih, whh, b) per layer
        wl_ref = refs[1 + 3 * num_layers]
        bl_ref = refs[2 + 3 * num_layers]
        out_ref = refs[3 + 3 * num_layers]
        xp_scr = refs[4 + 3 * num_layers]                # (Tc*Bp, 4H) f32
        hbuf = refs[5 + 3 * num_layers]                  # (Tc*Bp, H)  f32
        hc_scr = refs[6 + 3 * num_layers:]               # h0,c0,h1,c1,... (Bp,H)

        # Zero the recurrent carries once, at the first time chunk.
        @pl.when(pl.program_id(0) == 0)
        def _():
            for r in hc_scr:
                r[...] = jnp.zeros_like(r)

        for l in range(num_layers):
            wih_ref = layer_refs[3 * l + 0]
            whh_ref = layer_refs[3 * l + 1]
            b_ref = layer_refs[3 * l + 2]
            h_scr = hc_scr[2 * l + 0]
            c_scr = hc_scr[2 * l + 1]
            src = x_ref if l == 0 else hbuf              # layer input for this chunk
            mm_dtype = wih_ref.dtype

            # Hoisted per-chunk input projection: one lane-dense
            # (Tc*Bp, D_in) x (D_in, 4H=128) matmul, combined bias folded in.
            # Fully read from `src` before the recurrence overwrites hbuf.
            xp_scr[...] = (
                jnp.dot(src[...].astype(mm_dtype), wih_ref[...],
                        preferred_element_type=jnp.float32)
                + b_ref[...])

            whh = whh_ref[...]

            def step(t, carry):
                h, c = carry
                row = pl.multiple_of(t * Bp, 8)           # sublane-aligned offset
                # Single fused-gate matmul per step: (Bp, H) x (H, 4H=128).
                pre = xp_scr[pl.ds(row, Bp), :] + jnp.dot(
                    h.astype(mm_dtype), whh,
                    preferred_element_type=jnp.float32)
                # One full-width tanh: i/f/o columns were pre-scaled by 0.5 in
                # prepare_params, so sigmoid(x) == 0.5*(tanh(x/2)+1) here.
                tg = jnp.tanh(pre)
                i_g = 0.5 * (tg[:, 0 * H:1 * H] + 1.0)    # PyTorch gate order
                f_g = 0.5 * (tg[:, 1 * H:2 * H] + 1.0)
                g_g = tg[:, 2 * H:3 * H]
                o_g = 0.5 * (tg[:, 3 * H:4 * H] + 1.0)
                c_new = f_g * c + i_g * g_g
                h_new = o_g * jnp.tanh(c_new)
                hbuf[pl.ds(row, Bp), :] = h_new
                return h_new, c_new

            h_fin, c_fin = jax.lax.fori_loop(
                0, Tc, step, (h_scr[...], c_scr[...]), unroll=True)
            h_scr[...] = h_fin
            c_scr[...] = c_fin

        # Fused Linear(H, 1) head on this chunk's hidden states.
        # VPU multiply + row reduce (avoids an N=1 MXU push).  The module
        # returns the PRE-tanh vecs, so no tanh here (dead work removed).
        v = (jnp.sum(hbuf[...] * wl_ref[...], axis=-1, keepdims=True)
             + bl_ref[...])
        out_ref[...] = v.astype(out_ref.dtype)

    return kernel


# ----------------------------------------------------------------------------
# Params (PyTorch shapes), one-time layout prep, and forward.
# ----------------------------------------------------------------------------
def init_multi_lstm_params(key, input_dim, hidden_dim, num_layers=1):
    """Deterministic init mimicking PyTorch: U(-1/sqrt(H), 1/sqrt(H))."""
    bound = 1.0 / float(np.sqrt(hidden_dim))
    params = {"layers": []}
    for layer in range(num_layers):
        d_in = input_dim if layer == 0 else hidden_dim
        key, k1, k2, k3, k4 = jax.random.split(key, 5)
        params["layers"].append({
            "w_ih": jax.random.uniform(k1, (4 * hidden_dim, d_in),
                                       jnp.float32, -bound, bound),
            "w_hh": jax.random.uniform(k2, (4 * hidden_dim, hidden_dim),
                                       jnp.float32, -bound, bound),
            "b_ih": jax.random.uniform(k3, (4 * hidden_dim,),
                                       jnp.float32, -bound, bound),
            "b_hh": jax.random.uniform(k4, (4 * hidden_dim,),
                                       jnp.float32, -bound, bound),
        })
    key, k5, k6 = jax.random.split(key, 3)
    params["linear_w"] = jax.random.uniform(k5, (1, hidden_dim),
                                            jnp.float32, -bound, bound)
    params["linear_b"] = jax.random.uniform(k6, (1,),
                                            jnp.float32, -bound, bound)
    return params


def prepare_params(raw, matmul_dtype=jnp.float32):
    """One-time layout prep: PyTorch shapes -> kernel-friendly layouts.

    Folds the sigmoid->tanh identity into the weights: i/f/o gate columns are
    scaled by 0.5 (exact), so the kernel needs a single full-width tanh.
    Optionally stores the matmul operands in bf16 (gate math stays f32).
    """
    H = raw["linear_w"].shape[1]
    col_scale = jnp.concatenate([
        jnp.full((H,), 0.5, jnp.float32),   # i
        jnp.full((H,), 0.5, jnp.float32),   # f
        jnp.ones((H,), jnp.float32),        # g (plain tanh)
        jnp.full((H,), 0.5, jnp.float32),   # o
    ])
    layers = []
    for lp in raw["layers"]:
        wih_t = jnp.transpose(lp["w_ih"]) * col_scale          # (D_in, 4H)
        whh_t = jnp.transpose(lp["w_hh"]) * col_scale          # (H, 4H)
        b = ((lp["b_ih"] + lp["b_hh"]) * col_scale).reshape(1, -1)  # (1, 4H)
        layers.append({
            "wih_t": wih_t.astype(matmul_dtype),
            "whh_t": whh_t.astype(matmul_dtype),
            "b": b.astype(jnp.float32),     # added post-matmul, stays f32
        })
    return {
        "layers": layers,
        "wl": raw["linear_w"].reshape(1, -1).astype(jnp.float32),  # (1, H)
        "bl": raw["linear_b"].reshape(1, 1).astype(jnp.float32),   # (1, 1)
    }


@jax.jit
def multi_lstm_forward(prepped, data):
    """data: (S, B, D) [nn.LSTM default layout] -> vecs: (S, B, 1)."""
    S, B, D = data.shape
    layers = prepped["layers"]
    num_layers = len(layers)
    H = prepped["wl"].shape[1]
    H4 = 4 * H

    # Pad batch to full 8-sublane tiles; pad time to a multiple of the chunk.
    Bp = ((B + 7) // 8) * 8
    Tc = min(S, 8)                       # time steps per grid step (unroll cap)
    num_chunks = -(-S // Tc)
    Sp = num_chunks * Tc

    x = data
    if Bp != B or Sp != S:
        x = jnp.pad(x, ((0, Sp - S), (0, Bp - B), (0, 0)))
    x2 = x.reshape(Sp * Bp, D).astype(layers[0]["wih_t"].dtype)

    kernel = _make_fused_kernel(num_layers, Tc, Bp, H)

    in_specs = [pl.BlockSpec((Tc * Bp, D), lambda t: (t, 0))]
    args = [x2]
    for lp in layers:
        d_in = lp["wih_t"].shape[0]
        in_specs += [
            pl.BlockSpec((d_in, H4), lambda t: (0, 0)),
            pl.BlockSpec((H, H4), lambda t: (0, 0)),
            pl.BlockSpec((1, H4), lambda t: (0, 0)),
        ]
        args += [lp["wih_t"], lp["whh_t"], lp["b"]]
    in_specs += [pl.BlockSpec((1, H), lambda t: (0, 0)),
                 pl.BlockSpec((1, 1), lambda t: (0, 0))]
    args += [prepped["wl"], prepped["bl"]]

    scratch = (
        [pltpu.VMEM((Tc * Bp, H4), jnp.float32),   # per-chunk input projection
         pltpu.VMEM((Tc * Bp, H), jnp.float32)]    # per-chunk hidden states
        + [pltpu.VMEM((Bp, H), jnp.float32)] * (2 * num_layers))  # h/c carries

    out = pl.pallas_call(
        kernel,
        out_shape=jax.ShapeDtypeStruct((Sp * Bp, 1), jnp.float32),
        grid=(num_chunks,),
        in_specs=in_specs,
        out_specs=pl.BlockSpec((Tc * Bp, 1), lambda t: (t, 0)),
        scratch_shapes=scratch,
        compiler_params=pltpu.CompilerParams(
            dimension_semantics=("arbitrary",)),   # serial recurrence over time
    )(*args)

    return out.reshape(Sp, Bp, 1)[:S, :B, :]


# ----------------------------------------------------------------------------
# Pure-JAX reference (standard sigmoid/tanh gates, unscaled raw params).
# ----------------------------------------------------------------------------
def _reference_forward(raw, data):
    H = raw["linear_w"].shape[1]
    B = data.shape[1]
    x = data
    for lp in raw["layers"]:
        wih, whh = lp["w_ih"], lp["w_hh"]
        b = lp["b_ih"] + lp["b_hh"]

        def step(carry, x_t):
            h, c = carry
            pre = x_t @ wih.T + h @ whh.T + b
            i = jax.nn.sigmoid(pre[:, 0 * H:1 * H])
            f = jax.nn.sigmoid(pre[:, 1 * H:2 * H])
            g = jnp.tanh(pre[:, 2 * H:3 * H])
            o = jax.nn.sigmoid(pre[:, 3 * H:4 * H])
            c = f * c + i * g
            h = o * jnp.tanh(c)
            return (h, c), h

        init = (jnp.zeros((B, H), jnp.float32), jnp.zeros((B, H), jnp.float32))
        _, hs = jax.lax.scan(step, init, x)
        x = hs
    return x @ raw["linear_w"].T + raw["linear_b"]


if __name__ == "__main__":
    SEQ, BATCH, INPUT_DIM, HIDDEN_DIM = 8, 2, 16, 32

    key = jax.random.PRNGKey(0)
    key, pkey, xkey = jax.random.split(key, 3)
    x = jax.random.normal(xkey, (SEQ, BATCH, INPUT_DIM), dtype=jnp.float32)

    # --- 1 layer (module default), f32 matmuls ------------------------------
    raw1 = init_multi_lstm_params(pkey, INPUT_DIM, HIDDEN_DIM, num_layers=1)
    vecs = multi_lstm_forward(prepare_params(raw1), x)
    jax.block_until_ready(vecs)
    assert vecs.shape == (SEQ, BATCH, 1), vecs.shape
    np.testing.assert_allclose(np.asarray(vecs),
                               np.asarray(_reference_forward(raw1, x)),
                               rtol=1e-4, atol=1e-4)

    # --- 2 layers fused in a single pallas_call ------------------------------
    key, pkey2 = jax.random.split(key)
    raw2 = init_multi_lstm_params(pkey2, INPUT_DIM, HIDDEN_DIM, num_layers=2)
    vecs2 = multi_lstm_forward(prepare_params(raw2), x)
    jax.block_until_ready(vecs2)
    np.testing.assert_allclose(np.asarray(vecs2),
                               np.asarray(_reference_forward(raw2, x)),
                               rtol=1e-4, atol=1e-4)

    # --- 1 layer, bf16 MXU operands (gate/cell math stays f32) ---------------
    vecs_bf16 = multi_lstm_forward(
        prepare_params(raw1, matmul_dtype=jnp.bfloat16), x)
    jax.block_until_ready(vecs_bf16)
    np.testing.assert_allclose(np.asarray(vecs_bf16),
                               np.asarray(_reference_forward(raw1, x)),
                               rtol=5e-2, atol=5e-2)

    print("KERNEL_OK")
</pallas_src>

<mosaic_0001>
module attributes {stable_mosaic.version = 11 : i64} {
  func.func @kernel(%arg0: i32, %arg1: memref<64x16xf32, #tpu.memory_space<vmem>>, %arg2: memref<16x128xf32, #tpu.memory_space<vmem>>, %arg3: memref<32x128xf32, #tpu.memory_space<vmem>>, %arg4: memref<1x128xf32, #tpu.memory_space<vmem>>, %arg5: memref<1x32xf32, #tpu.memory_space<vmem>>, %arg6: memref<1x1xf32, #tpu.memory_space<vmem>>, %arg7: memref<64x1xf32, #tpu.memory_space<vmem>>, %arg8: memref<64x128xf32, #tpu.memory_space<vmem>>, %arg9: memref<64x32xf32, #tpu.memory_space<vmem>>, %arg10: memref<8x32xf32, #tpu.memory_space<vmem>>, %arg11: memref<8x32xf32, #tpu.memory_space<vmem>>) attributes {dimension_semantics = [#tpu.dimension_semantics<arbitrary>], iteration_bounds = array<i64: 1>, scalar_prefetch = 0 : i64, scratch_operands = 4 : i64, tpu.core_type = #tpu.core_type<tc>, window_params = [{transform_indices = @transform_0, window_bounds = array<i64: 64, 16>}, {pipeline_mode = #tpu.pipeline_mode<synchronous>, transform_indices = @transform_1, window_bounds = array<i64: 16, 128>}, {pipeline_mode = #tpu.pipeline_mode<synchronous>, transform_indices = @transform_2, window_bounds = array<i64: 32, 128>}, {pipeline_mode = #tpu.pipeline_mode<synchronous>, transform_indices = @transform_3, window_bounds = array<i64: 1, 128>}, {pipeline_mode = #tpu.pipeline_mode<synchronous>, transform_indices = @transform_4, window_bounds = array<i64: 1, 32>}, {pipeline_mode = #tpu.pipeline_mode<synchronous>, transform_indices = @transform_5, window_bounds = array<i64: 1, 1>}, {transform_indices = @transform_6, window_bounds = array<i64: 64, 1>}]} {
    %c0_i32 = arith.constant 0 : i32
    %0 = arith.cmpi eq, %arg0, %c0_i32 : i32
    %1 = arith.extui %0 : i1 to i32
    %c0_i32_0 = arith.constant 0 : i32
    %2 = arith.cmpi ne, %1, %c0_i32_0 : i32
    scf.if %2 {
      %cst_108 = arith.constant 0.000000e+00 : f32
      %265 = vector.broadcast %cst_108 : f32 to vector<8x32xf32>
      %c0_109 = arith.constant 0 : index
      %c0_110 = arith.constant 0 : index
      %266 = vector.load %arg10[%c0_109, %c0_110] : memref<8x32xf32, #tpu.memory_space<vmem>>, vector<8x32xf32>
      tpu.vector_store %arg10[%c0_109, %c0_110], %265 {strides = array<i32>} : memref<8x32xf32, #tpu.memory_space<vmem>>, vector<8x32xf32>,
      %cst_111 = arith.constant 0.000000e+00 : f32
      %267 = vector.broadcast %cst_111 : f32 to vector<8x32xf32>
      %c0_112 = arith.constant 0 : index
      %c0_113 = arith.constant 0 : index
      %268 = vector.load %arg11[%c0_112, %c0_113] : memref<8x32xf32, #tpu.memory_space<vmem>>, vector<8x32xf32>
      tpu.vector_store %arg11[%c0_112, %c0_113], %267 {strides = array<i32>} : memref<8x32xf32, #tpu.memory_space<vmem>>, vector<8x32xf32>,
    } else {
    }
    %c0 = arith.constant 0 : index
    %c0_1 = arith.constant 0 : index
    %3 = vector.load %arg1[%c0, %c0_1] : memref<64x16xf32, #tpu.memory_space<vmem>>, vector<64x16xf32>
    %c0_2 = arith.constant 0 : index
    %c0_3 = arith.constant 0 : index
    %4 = vector.load %arg2[%c0_2, %c0_3] : memref<16x128xf32, #tpu.memory_space<vmem>>, vector<16x128xf32>
    %cst = arith.constant dense<0.000000e+00> : vector<64x128xf32>
    %5 = tpu.matmul %3, %4, %cst {dimension_numbers = #tpu.dot_dimension_numbers<[1], [0], [0], [1], [0, 0, 1, 1], [], []>} : vector<64x16xf32>, vector<16x128xf32>, vector<64x128xf32> -> vector<64x128xf32>
    %c0_4 = arith.constant 0 : index
    %c0_5 = arith.constant 0 : index
    %6 = vector.load %arg4[%c0_4, %c0_5] : memref<1x128xf32, #tpu.memory_space<vmem>>, vector<1x128xf32>
    %7 = vector.broadcast %6 : vector<1x128xf32> to vector<64x128xf32>
    %8 = arith.addf %5, %7 : vector<64x128xf32>
    %c0_6 = arith.constant 0 : index
    %c0_7 = arith.constant 0 : index
    %9 = vector.load %arg8[%c0_6, %c0_7] : memref<64x128xf32, #tpu.memory_space<vmem>>, vector<64x128xf32>
    tpu.vector_store %arg8[%c0_6, %c0_7], %8 {strides = array<i32>} : memref<64x128xf32, #tpu.memory_space<vmem>>, vector<64x128xf32>,
    %c0_8 = arith.constant 0 : index
    %c0_9 = arith.constant 0 : index
    %10 = vector.load %arg3[%c0_8, %c0_9] : memref<32x128xf32, #tpu.memory_space<vmem>>, vector<32x128xf32>
    %c0_10 = arith.constant 0 : index
    %c0_11 = arith.constant 0 : index
    %11 = vector.load %arg10[%c0_10, %c0_11] : memref<8x32xf32, #tpu.memory_space<vmem>>, vector<8x32xf32>
    %c0_12 = arith.constant 0 : index
    %c0_13 = arith.constant 0 : index
    %12 = vector.load %arg11[%c0_12, %c0_13] : memref<8x32xf32, #tpu.memory_space<vmem>>, vector<8x32xf32>
    %c0_i32_14 = arith.constant 0 : i32
    %c8_i32 = arith.constant 8 : i32
    %13 = arith.muli %c0_i32_14, %c8_i32 : i32
    %14 = tpu.assume_multiple %13, 8 : i32
    %15 = arith.index_cast %14 : i32 to index
    %c0_15 = arith.constant 0 : index
    %16 = vector.load %arg8[%15, %c0_15] : memref<64x128xf32, #tpu.memory_space<vmem>>, vector<8x128xf32>
    %cst_16 = arith.constant dense<0.000000e+00> : vector<8x128xf32>
    %17 = tpu.matmul %11, %10, %cst_16 {dimension_numbers = #tpu.dot_dimension_numbers<[1], [0], [0], [1], [0, 0, 1, 1], [], []>} : vector<8x32xf32>, vector<32x128xf32>, vector<8x128xf32> -> vector<8x128xf32>
    %18 = arith.addf %16, %17 : vector<8x128xf32>
    %19 = math.tanh %18 : vector<8x128xf32>
    %20 = vector.extract_strided_slice %19 {offsets = [0, 0], sizes = [8, 32], strides = [1, 1]} : vector<8x128xf32> to vector<8x32xf32>
    %cst_17 = arith.constant 1.000000e+00 : f32
    %21 = vector.broadcast %cst_17 : f32 to vector<8x32xf32>
    %22 = arith.addf %20, %21 : vector<8x32xf32>
    %cst_18 = arith.constant 5.000000e-01 : f32
    %23 = vector.broadcast %cst_18 : f32 to vector<8x32xf32>
    %24 = arith.mulf %23, %22 : vector<8x32xf32>
    %25 = vector.extract_strided_slice %19 {offsets = [0, 32], sizes = [8, 32], strides = [1, 1]} : vector<8x128xf32> to vector<8x32xf32>
    %cst_19 = arith.constant 1.000000e+00 : f32
    %26 = vector.broadcast %cst_19 : f32 to vector<8x32xf32>
    %27 = arith.addf %25, %26 : vector<8x32xf32>
    %cst_20 = arith.constant 5.000000e-01 : f32
    %28 = vector.broadcast %cst_20 : f32 to vector<8x32xf32>
    %29 = arith.mulf %28, %27 : vector<8x32xf32>
    %30 = vector.extract_strided_slice %19 {offsets = [0, 64], sizes = [8, 32], strides = [1, 1]} : vector<8x128xf32> to vector<8x32xf32>
    %31 = vector.extract_strided_slice %19 {offsets = [0, 96], sizes = [8, 32], strides = [1, 1]} : vector<8x128xf32> to vector<8x32xf32>
    %cst_21 = arith.constant 1.000000e+00 : f32
    %32 = vector.broadcast %cst_21 : f32 to vector<8x32xf32>
    %33 = arith.addf %31, %32 : vector<8x32xf32>
    %cst_22 = arith.constant 5.000000e-01 : f32
    %34 = vector.broadcast %cst_22 : f32 to vector<8x32xf32>
    %35 = arith.mulf %34, %33 : vector<8x32xf32>
    %36 = arith.mulf %29, %12 : vector<8x32xf32>
    %37 = arith.mulf %24, %30 : vector<8x32xf32>
    %38 = arith.addf %36, %37 : vector<8x32xf32>
    %39 = math.tanh %38 : vector<8x32xf32>
    %40 = arith.mulf %35, %39 : vector<8x32xf32>
    %41 = arith.index_cast %14 : i32 to index
    %c0_23 = arith.constant 0 : index
    %42 = vector.load %arg9[%41, %c0_23] : memref<64x32xf32, #tpu.memory_space<vmem>>, vector<8x32xf32>
    tpu.vector_store %arg9[%41, %c0_23], %40 {strides = array<i32>} : memref<64x32xf32, #tpu.memory_space<vmem>>, vector<8x32xf32>,
    %c1_i32 = arith.constant 1 : i32
    %c8_i32_24 = arith.constant 8 : i32
    %43 = arith.muli %c1_i32, %c8_i32_24 : i32
    %44 = tpu.assume_multiple %43, 8 : i32
    %45 = arith.index_cast %44 : i32 to index
    %c0_25 = arith.constant 0 : index
    %46 = vector.load %arg8[%45, %c0_25] : memref<64x128xf32, #tpu.memory_space<vmem>>, vector<8x128xf32>
    %cst_26 = arith.constant dense<0.000000e+00> : vector<8x128xf32>
    %47 = tpu.matmul %40, %10, %cst_26 {dimension_numbers = #tpu.dot_dimension_numbers<[1], [0], [0], [1], [0, 0, 1, 1], [], []>} : vector<8x32xf32>, vector<32x128xf32>, vector<8x128xf32> -> vector<8x128xf32>
    %48 = arith.addf %46, %47 : vector<8x128xf32>
    %49 = math.tanh %48 : vector<8x128xf32>
    %50 = vector.extract_strided_slice %49 {offsets = [0, 0], sizes = [8, 32], strides = [1, 1]} : vector<8x128xf32> to vector<8x32xf32>
    %cst_27 = arith.constant 1.000000e+00 : f32
    %51 = vector.broadcast %cst_27 : f32 to vector<8x32xf32>
    %52 = arith.addf %50, %51 : vector<8x32xf32>
    %cst_28 = arith.constant 5.000000e-01 : f32
    %53 = vector.broadcast %cst_28 : f32 to vector<8x32xf32>
    %54 = arith.mulf %53, %52 : vector<8x32xf32>
    %55 = vector.extract_strided_slice %49 {offsets = [0, 32], sizes = [8, 32], strides = [1, 1]} : vector<8x128xf32> to vector<8x32xf32>
    %cst_29 = arith.constant 1.000000e+00 : f32
    %56 = vector.broadcast %cst_29 : f32 to vector<8x32xf32>
    %57 = arith.addf %55, %56 : vector<8x32xf32>
    %cst_30 = arith.constant 5.000000e-01 : f32
    %58 = vector.broadcast %cst_30 : f32 to vector<8x32xf32>
    %59 = arith.mulf %58, %57 : vector<8x32xf32>
    %60 = vector.extract_strided_slice %49 {offsets = [0, 64], sizes = [8, 32], strides = [1, 1]} : vector<8x128xf32> to vector<8x32xf32>
    %61 = vector.extract_strided_slice %49 {offsets = [0, 96], sizes = [8, 32], strides = [1, 1]} : vector<8x128xf32> to vector<8x32xf32>
    %cst_31 = arith.constant 1.000000e+00 : f32
    %62 = vector.broadcast %cst_31 : f32 to vector<8x32xf32>
    %63 = arith.addf %61, %62 : vector<8x32xf32>
    %cst_32 = arith.constant 5.000000e-01 : f32
    %64 = vector.broadcast %cst_32 : f32 to vector<8x32xf32>
    %65 = arith.mulf %64, %63 : vector<8x32xf32>
    %66 = arith.mulf %59, %38 : vector<8x32xf32>
    %67 = arith.mulf %54, %60 : vector<8x32xf32>
    %68 = arith.addf %66, %67 : vector<8x32xf32>
    %69 = math.tanh %68 : vector<8x32xf32>
    %70 = arith.mulf %65, %69 : vector<8x32xf32>
    %71 = arith.index_cast %44 : i32 to index
    %c0_33 = arith.constant 0 : index
    %72 = vector.load %arg9[%71, %c0_33] : memref<64x32xf32, #tpu.memory_space<vmem>>, vector<8x32xf32>
    tpu.vector_store %arg9[%71, %c0_33], %70 {strides = array<i32>} : memref<64x32xf32, #tpu.memory_space<vmem>>, vector<8x32xf32>,
    %c2_i32 = arith.constant 2 : i32
    %c8_i32_34 = arith.constant 8 : i32
    %73 = arith.muli %c2_i32, %c8_i32_34 : i32
    %74 = tpu.assume_multiple %73, 8 : i32
    %75 = arith.index_cast %74 : i32 to index
    %c0_35 = arith.constant 0 : index
    %76 = vector.load %arg8[%75, %c0_35] : memref<64x128xf32, #tpu.memory_space<vmem>>, vector<8x128xf32>
    %cst_36 = arith.constant dense<0.000000e+00> : vector<8x128xf32>
    %77 = tpu.matmul %70, %10, %cst_36 {dimension_numbers = #tpu.dot_dimension_numbers<[1], [0], [0], [1], [0, 0, 1, 1], [], []>} : vector<8x32xf32>, vector<32x128xf32>, vector<8x128xf32> -> vector<8x128xf32>
    %78 = arith.addf %76, %77 : vector<8x128xf32>
    %79 = math.tanh %78 : vector<8x128xf32>
    %80 = vector.extract_strided_slice %79 {offsets = [0, 0], sizes = [8, 32], strides = [1, 1]} : vector<8x128xf32> to vector<8x32xf32>
    %cst_37 = arith.constant 1.000000e+00 : f32
    %81 = vector.broadcast %cst_37 : f32 to vector<8x32xf32>
    %82 = arith.addf %80, %81 : vector<8x32xf32>
    %cst_38 = arith.constant 5.000000e-01 : f32
    %83 = vector.broadcast %cst_38 : f32 to vector<8x32xf32>
    %84 = arith.mulf %83, %82 : vector<8x32xf32>
    %85 = vector.extract_strided_slice %79 {offsets = [0, 32], sizes = [8, 32], strides = [1, 1]} : vector<8x128xf32> to vector<8x32xf32>
    %cst_39 = arith.constant 1.000000e+00 : f32
    %86 = vector.broadcast %cst_39 : f32 to vector<8x32xf32>
    %87 = arith.addf %85, %86 : vector<8x32xf32>
    %cst_40 = arith.constant 5.000000e-01 : f32
    %88 = vector.broadcast %cst_40 : f32 to vector<8x32xf32>
    %89 = arith.mulf %88, %87 : vector<8x32xf32>
    %90 = vector.extract_strided_slice %79 {offsets = [0, 64], sizes = [8, 32], strides = [1, 1]} : vector<8x128xf32> to vector<8x32xf32>
    %91 = vector.extract_strided_slice %79 {offsets = [0, 96], sizes = [8, 32], strides = [1, 1]} : vector<8x128xf32> to vector<8x32xf32>
    %cst_41 = arith.constant 1.000000e+00 : f32
    %92 = vector.broadcast %cst_41 : f32 to vector<8x32xf32>
    %93 = arith.addf %91, %92 : vector<8x32xf32>
    %cst_42 = arith.constant 5.000000e-01 : f32
    %94 = vector.broadcast %cst_42 : f32 to vector<8x32xf32>
    %95 = arith.mulf %94, %93 : vector<8x32xf32>
    %96 = arith.mulf %89, %68 : vector<8x32xf32>
    %97 = arith.mulf %84, %90 : vector<8x32xf32>
    %98 = arith.addf %96, %97 : vector<8x32xf32>
    %99 = math.tanh %98 : vector<8x32xf32>
    %100 = arith.mulf %95, %99 : vector<8x32xf32>
    %101 = arith.index_cast %74 : i32 to index
    %c0_43 = arith.constant 0 : index
    %102 = vector.load %arg9[%101, %c0_43] : memref<64x32xf32, #tpu.memory_space<vmem>>, vector<8x32xf32>
    tpu.vector_store %arg9[%101, %c0_43], %100 {strides = array<i32>} : memref<64x32xf32, #tpu.memory_space<vmem>>, vector<8x32xf32>,
    %c3_i32 = arith.constant 3 : i32
    %c8_i32_44 = arith.constant 8 : i32
    %103 = arith.muli %c3_i32, %c8_i32_44 : i32
    %104 = tpu.assume_multiple %103, 8 : i32
    %105 = arith.index_cast %104 : i32 to index
    %c0_45 = arith.constant 0 : index
    %106 = vector.load %arg8[%105, %c0_45] : memref<64x128xf32, #tpu.memory_space<vmem>>, vector<8x128xf32>
    %cst_46 = arith.constant dense<0.000000e+00> : vector<8x128xf32>
    %107 = tpu.matmul %100, %10, %cst_46 {dimension_numbers = #tpu.dot_dimension_numbers<[1], [0], [0], [1], [0, 0, 1, 1], [], []>} : vector<8x32xf32>, vector<32x128xf32>, vector<8x128xf32> -> vector<8x128xf32>
    %108 = arith.addf %106, %107 : vector<8x128xf32>
    %109 = math.tanh %108 : vector<8x128xf32>
    %110 = vector.extract_strided_slice %109 {offsets = [0, 0], sizes = [8, 32], strides = [1, 1]} : vector<8x128xf32> to vector<8x32xf32>
    %cst_47 = arith.constant 1.000000e+00 : f32
    %111 = vector.broadcast %cst_47 : f32 to vector<8x32xf32>
    %112 = arith.addf %110, %111 : vector<8x32xf32>
    %cst_48 = arith.constant 5.000000e-01 : f32
    %113 = vector.broadcast %cst_48 : f32 to vector<8x32xf32>
    %114 = arith.mulf %113, %112 : vector<8x32xf32>
    %115 = vector.extract_strided_slice %109 {offsets = [0, 32], sizes = [8, 32], strides = [1, 1]} : vector<8x128xf32> to vector<8x32xf32>
    %cst_49 = arith.constant 1.000000e+00 : f32
    %116 = vector.broadcast %cst_49 : f32 to vector<8x32xf32>
    %117 = arith.addf %115, %116 : vector<8x32xf32>
    %cst_50 = arith.constant 5.000000e-01 : f32
    %118 = vector.broadcast %cst_50 : f32 to vector<8x32xf32>
    %119 = arith.mulf %118, %117 : vector<8x32xf32>
    %120 = vector.extract_strided_slice %109 {offsets = [0, 64], sizes = [8, 32], strides = [1, 1]} : vector<8x128xf32> to vector<8x32xf32>
    %121 = vector.extract_strided_slice %109 {offsets = [0, 96], sizes = [8, 32], strides = [1, 1]} : vector<8x128xf32> to vector<8x32xf32>
    %cst_51 = arith.constant 1.000000e+00 : f32
    %122 = vector.broadcast %cst_51 : f32 to vector<8x32xf32>
    %123 = arith.addf %121, %122 : vector<8x32xf32>
    %cst_52 = arith.constant 5.000000e-01 : f32
    %124 = vector.broadcast %cst_52 : f32 to vector<8x32xf32>
    %125 = arith.mulf %124, %123 : vector<8x32xf32>
    %126 = arith.mulf %119, %98 : vector<8x32xf32>
    %127 = arith.mulf %114, %120 : vector<8x32xf32>
    %128 = arith.addf %126, %127 : vector<8x32xf32>
    %129 = math.tanh %128 : vector<8x32xf32>
    %130 = arith.mulf %125, %129 : vector<8x32xf32>
    %131 = arith.index_cast %104 : i32 to index
    %c0_53 = arith.constant 0 : index
    %132 = vector.load %arg9[%131, %c0_53] : memref<64x32xf32, #tpu.memory_space<vmem>>, vector<8x32xf32>
    tpu.vector_store %arg9[%131, %c0_53], %130 {strides = array<i32>} : memref<64x32xf32, #tpu.memory_space<vmem>>, vector<8x32xf32>,
    %c4_i32 = arith.constant 4 : i32
    %c8_i32_54 = arith.constant 8 : i32
    %133 = arith.muli %c4_i32, %c8_i32_54 : i32
    %134 = tpu.assume_multiple %133, 8 : i32
    %135 = arith.index_cast %134 : i32 to index
    %c0_55 = arith.constant 0 : index
    %136 = vector.load %arg8[%135, %c0_55] : memref<64x128xf32, #tpu.memory_space<vmem>>, vector<8x128xf32>
    %cst_56 = arith.constant dense<0.000000e+00> : vector<8x128xf32>
    %137 = tpu.matmul %130, %10, %cst_56 {dimension_numbers = #tpu.dot_dimension_numbers<[1], [0], [0], [1], [0, 0, 1, 1], [], []>} : vector<8x32xf32>, vector<32x128xf32>, vector<8x128xf32> -> vector<8x128xf32>
    %138 = arith.addf %136, %137 : vector<8x128xf32>
    %139 = math.tanh %138 : vector<8x128xf32>
    %140 = vector.extract_strided_slice %139 {offsets = [0, 0], sizes = [8, 32], strides = [1, 1]} : vector<8x128xf32> to vector<8x32xf32>
    %cst_57 = arith.constant 1.000000e+00 : f32
    %141 = vector.broadcast %cst_57 : f32 to vector<8x32xf32>
    %142 = arith.addf %140, %141 : vector<8x32xf32>
    %cst_58 = arith.constant 5.000000e-01 : f32
    %143 = vector.broadcast %cst_58 : f32 to vector<8x32xf32>
    %144 = arith.mulf %143, %142 : vector<8x32xf32>
    %145 = vector.extract_strided_slice %139 {offsets = [0, 32], sizes = [8, 32], strides = [1, 1]} : vector<8x128xf32> to vector<8x32xf32>
    %cst_59 = arith.constant 1.000000e+00 : f32
    %146 = vector.broadcast %cst_59 : f32 to vector<8x32xf32>
    %147 = arith.addf %145, %146 : vector<8x32xf32>
    %cst_60 = arith.constant 5.000000e-01 : f32
    %148 = vector.broadcast %cst_60 : f32 to vector<8x32xf32>
    %149 = arith.mulf %148, %147 : vector<8x32xf32>
    %150 = vector.extract_strided_slice %139 {offsets = [0, 64], sizes = [8, 32], strides = [1, 1]} : vector<8x128xf32> to vector<8x32xf32>
    %151 = vector.extract_strided_slice %139 {offsets = [0, 96], sizes = [8, 32], strides = [1, 1]} : vector<8x128xf32> to vector<8x32xf32>
    %cst_61 = arith.constant 1.000000e+00 : f32
    %152 = vector.broadcast %cst_61 : f32 to vector<8x32xf32>
    %153 = arith.addf %151, %152 : vector<8x32xf32>
    %cst_62 = arith.constant 5.000000e-01 : f32
    %154 = vector.broadcast %cst_62 : f32 to vector<8x32xf32>
    %155 = arith.mulf %154, %153 : vector<8x32xf32>
    %156 = arith.mulf %149, %128 : vector<8x32xf32>
    %157 = arith.mulf %144, %150 : vector<8x32xf32>
    %158 = arith.addf %156, %157 : vector<8x32xf32>
    %159 = math.tanh %158 : vector<8x32xf32>
    %160 = arith.mulf %155, %159 : vector<8x32xf32>
    %161 = arith.index_cast %134 : i32 to index
    %c0_63 = arith.constant 0 : index
    %162 = vector.load %arg9[%161, %c0_63] : memref<64x32xf32, #tpu.memory_space<vmem>>, vector<8x32xf32>
    tpu.vector_store %arg9[%161, %c0_63], %160 {strides = array<i32>} : memref<64x32xf32, #tpu.memory_space<vmem>>, vector<8x32xf32>,
    %c5_i32 = arith.constant 5 : i32
    %c8_i32_64 = arith.constant 8 : i32
    %163 = arith.muli %c5_i32, %c8_i32_64 : i32
    %164 = tpu.assume_multiple %163, 8 : i32
    %165 = arith.index_cast %164 : i32 to index
    %c0_65 = arith.constant 0 : index
    %166 = vector.load %arg8[%165, %c0_65] : memref<64x128xf32, #tpu.memory_space<vmem>>, vector<8x128xf32>
    %cst_66 = arith.constant dense<0.000000e+00> : vector<8x128xf32>
    %167 = tpu.matmul %160, %10, %cst_66 {dimension_numbers = #tpu.dot_dimension_numbers<[1], [0], [0], [1], [0, 0, 1, 1], [], []>} : vector<8x32xf32>, vector<32x128xf32>, vector<8x128xf32> -> vector<8x128xf32>
    %168 = arith.addf %166, %167 : vector<8x128xf32>
    %169 = math.tanh %168 : vector<8x128xf32>
    %170 = vector.extract_strided_slice %169 {offsets = [0, 0], sizes = [8, 32], strides = [1, 1]} : vector<8x128xf32> to vector<8x32xf32>
    %cst_67 = arith.constant 1.000000e+00 : f32
    %171 = vector.broadcast %cst_67 : f32 to vector<8x32xf32>
    %172 = arith.addf %170, %171 : vector<8x32xf32>
    %cst_68 = arith.constant 5.000000e-01 : f32
    %173 = vector.broadcast %cst_68 : f32 to vector<8x32xf32>
    %174 = arith.mulf %173, %172 : vector<8x32xf32>
    %175 = vector.extract_strided_slice %169 {offsets = [0, 32], sizes = [8, 32], strides = [1, 1]} : vector<8x128xf32> to vector<8x32xf32>
    %cst_69 = arith.constant 1.000000e+00 : f32
    %176 = vector.broadcast %cst_69 : f32 to vector<8x32xf32>
    %177 = arith.addf %175, %176 : vector<8x32xf32>
    %cst_70 = arith.constant 5.000000e-01 : f32
    %178 = vector.broadcast %cst_70 : f32 to vector<8x32xf32>
    %179 = arith.mulf %178, %177 : vector<8x32xf32>
    %180 = vector.extract_strided_slice %169 {offsets = [0, 64], sizes = [8, 32], strides = [1, 1]} : vector<8x128xf32> to vector<8x32xf32>
    %181 = vector.extract_strided_slice %169 {offsets = [0, 96], sizes = [8, 32], strides = [1, 1]} : vector<8x128xf32> to vector<8x32xf32>
    %cst_71 = arith.constant 1.000000e+00 : f32
    %182 = vector.broadcast %cst_71 : f32 to vector<8x32xf32>
    %183 = arith.addf %181, %182 : vector<8x32xf32>
    %cst_72 = arith.constant 5.000000e-01 : f32
    %184 = vector.broadcast %cst_72 : f32 to vector<8x32xf32>
    %185 = arith.mulf %184, %183 : vector<8x32xf32>
    %186 = arith.mulf %179, %158 : vector<8x32xf32>
    %187 = arith.mulf %174, %180 : vector<8x32xf32>
    %188 = arith.addf %186, %187 : vector<8x32xf32>
    %189 = math.tanh %188 : vector<8x32xf32>
    %190 = arith.mulf %185, %189 : vector<8x32xf32>
    %191 = arith.index_cast %164 : i32 to index
    %c0_73 = arith.constant 0 : index
    %192 = vector.load %arg9[%191, %c0_73] : memref<64x32xf32, #tpu.memory_space<vmem>>, vector<8x32xf32>
    tpu.vector_store %arg9[%191, %c0_73], %190 {strides = array<i32>} : memref<64x32xf32, #tpu.memory_space<vmem>>, vector<8x32xf32>,
    %c6_i32 = arith.constant 6 : i32
    %c8_i32_74 = arith.constant 8 : i32
    %193 = arith.muli %c6_i32, %c8_i32_74 : i32
    %194 = tpu.assume_multiple %193, 8 : i32
    %195 = arith.index_cast %194 : i32 to index
    %c0_75 = arith.constant 0 : index
    %196 = vector.load %arg8[%195, %c0_75] : memref<64x128xf32, #tpu.memory_space<vmem>>, vector<8x128xf32>
    %cst_76 = arith.constant dense<0.000000e+00> : vector<8x128xf32>
    %197 = tpu.matmul %190, %10, %cst_76 {dimension_numbers = #tpu.dot_dimension_numbers<[1], [0], [0], [1], [0, 0, 1, 1], [], []>} : vector<8x32xf32>, vector<32x128xf32>, vector<8x128xf32> -> vector<8x128xf32>
    %198 = arith.addf %196, %197 : vector<8x128xf32>
    %199 = math.tanh %198 : vector<8x128xf32>
    %200 = vector.extract_strided_slice %199 {offsets = [0, 0], sizes = [8, 32], strides = [1, 1]} : vector<8x128xf32> to vector<8x32xf32>
    %cst_77 = arith.constant 1.000000e+00 : f32
    %201 = vector.broadcast %cst_77 : f32 to vector<8x32xf32>
    %202 = arith.addf %200, %201 : vector<8x32xf32>
    %cst_78 = arith.constant 5.000000e-01 : f32
    %203 = vector.broadcast %cst_78 : f32 to vector<8x32xf32>
    %204 = arith.mulf %203, %202 : vector<8x32xf32>
    %205 = vector.extract_strided_slice %199 {offsets = [0, 32], sizes = [8, 32], strides = [1, 1]} : vector<8x128xf32> to vector<8x32xf32>
    %cst_79 = arith.constant 1.000000e+00 : f32
    %206 = vector.broadcast %cst_79 : f32 to vector<8x32xf32>
    %207 = arith.addf %205, %206 : vector<8x32xf32>
    %cst_80 = arith.constant 5.000000e-01 : f32
    %208 = vector.broadcast %cst_80 : f32 to vector<8x32xf32>
    %209 = arith.mulf %208, %207 : vector<8x32xf32>
    %210 = vector.extract_strided_slice %199 {offsets = [0, 64], sizes = [8, 32], strides = [1, 1]} : vector<8x128xf32> to vector<8x32xf32>
    %211 = vector.extract_strided_slice %199 {offsets = [0, 96], sizes = [8, 32], strides = [1, 1]} : vector<8x128xf32> to vector<8x32xf32>
    %cst_81 = arith.constant 1.000000e+00 : f32
    %212 = vector.broadcast %cst_81 : f32 to vector<8x32xf32>
    %213 = arith.addf %211, %212 : vector<8x32xf32>
    %cst_82 = arith.constant 5.000000e-01 : f32
    %214 = vector.broadcast %cst_82 : f32 to vector<8x32xf32>
    %215 = arith.mulf %214, %213 : vector<8x32xf32>
    %216 = arith.mulf %209, %188 : vector<8x32xf32>
    %217 = arith.mulf %204, %210 : vector<8x32xf32>
    %218 = arith.addf %216, %217 : vector<8x32xf32>
    %219 = math.tanh %218 : vector<8x32xf32>
    %220 = arith.mulf %215, %219 : vector<8x32xf32>
    %221 = arith.index_cast %194 : i32 to index
    %c0_83 = arith.constant 0 : index
    %222 = vector.load %arg9[%221, %c0_83] : memref<64x32xf32, #tpu.memory_space<vmem>>, vector<8x32xf32>
    tpu.vector_store %arg9[%221, %c0_83], %220 {strides = array<i32>} : memref<64x32xf32, #tpu.memory_space<vmem>>, vector<8x32xf32>,
    %c7_i32 = arith.constant 7 : i32
    %c8_i32_84 = arith.constant 8 : i32
    %223 = arith.muli %c7_i32, %c8_i32_84 : i32
    %224 = tpu.assume_multiple %223, 8 : i32
    %225 = arith.index_cast %224 : i32 to index
    %c0_85 = arith.constant 0 : index
    %226 = vector.load %arg8[%225, %c0_85] : memref<64x128xf32, #tpu.memory_space<vmem>>, vector<8x128xf32>
    %cst_86 = arith.constant dense<0.000000e+00> : vector<8x128xf32>
    %227 = tpu.matmul %220, %10, %cst_86 {dimension_numbers = #tpu.dot_dimension_numbers<[1], [0], [0], [1], [0, 0, 1, 1], [], []>} : vector<8x32xf32>, vector<32x128xf32>, vector<8x128xf32> -> vector<8x128xf32>
    %228 = arith.addf %226, %227 : vector<8x128xf32>
    %229 = math.tanh %228 : vector<8x128xf32>
    %230 = vector.extract_strided_slice %229 {offsets = [0, 0], sizes = [8, 32], strides = [1, 1]} : vector<8x128xf32> to vector<8x32xf32>
    %cst_87 = arith.constant 1.000000e+00 : f32
    %231 = vector.broadcast %cst_87 : f32 to vector<8x32xf32>
    %232 = arith.addf %230, %231 : vector<8x32xf32>
    %cst_88 = arith.constant 5.000000e-01 : f32
    %233 = vector.broadcast %cst_88 : f32 to vector<8x32xf32>
    %234 = arith.mulf %233, %232 : vector<8x32xf32>
    %235 = vector.extract_strided_slice %229 {offsets = [0, 32], sizes = [8, 32], strides = [1, 1]} : vector<8x128xf32> to vector<8x32xf32>
    %cst_89 = arith.constant 1.000000e+00 : f32
    %236 = vector.broadcast %cst_89 : f32 to vector<8x32xf32>
    %237 = arith.addf %235, %236 : vector<8x32xf32>
    %cst_90 = arith.constant 5.000000e-01 : f32
    %238 = vector.broadcast %cst_90 : f32 to vector<8x32xf32>
    %239 = arith.mulf %238, %237 : vector<8x32xf32>
    %240 = vector.extract_strided_slice %229 {offsets = [0, 64], sizes = [8, 32], strides = [1, 1]} : vector<8x128xf32> to vector<8x32xf32>
    %241 = vector.extract_strided_slice %229 {offsets = [0, 96], sizes = [8, 32], strides = [1, 1]} : vector<8x128xf32> to vector<8x32xf32>
    %cst_91 = arith.constant 1.000000e+00 : f32
    %242 = vector.broadcast %cst_91 : f32 to vector<8x32xf32>
    %243 = arith.addf %241, %242 : vector<8x32xf32>
    %cst_92 = arith.constant 5.000000e-01 : f32
    %244 = vector.broadcast %cst_92 : f32 to vector<8x32xf32>
    %245 = arith.mulf %244, %243 : vector<8x32xf32>
    %246 = arith.mulf %239, %218 : vector<8x32xf32>
    %247 = arith.mulf %234, %240 : vector<8x32xf32>
    %248 = arith.addf %246, %247 : vector<8x32xf32>
    %249 = math.tanh %248 : vector<8x32xf32>
    %250 = arith.mulf %245, %249 : vector<8x32xf32>
    %251 = arith.index_cast %224 : i32 to index
    %c0_93 = arith.constant 0 : index
    %252 = vector.load %arg9[%251, %c0_93] : memref<64x32xf32, #tpu.memory_space<vmem>>, vector<8x32xf32>
    tpu.vector_store %arg9[%251, %c0_93], %250 {strides = array<i32>} : memref<64x32xf32, #tpu.memory_space<vmem>>, vector<8x32xf32>,
    %c8_i32_94 = arith.constant 8 : i32
    %c0_95 = arith.constant 0 : index
    %c0_96 = arith.constant 0 : index
    %253 = vector.load %arg10[%c0_95, %c0_96] : memref<8x32xf32, #tpu.memory_space<vmem>>, vector<8x32xf32>
    tpu.vector_store %arg10[%c0_95, %c0_96], %250 {strides = array<i32>} : memref<8x32xf32, #tpu.memory_space<vmem>>, vector<8x32xf32>,
    %c0_97 = arith.constant 0 : index
    %c0_98 = arith.constant 0 : index
    %254 = vector.load %arg11[%c0_97, %c0_98] : memref<8x32xf32, #tpu.memory_space<vmem>>, vector<8x32xf32>
    tpu.vector_store %arg11[%c0_97, %c0_98], %248 {strides = array<i32>} : memref<8x32xf32, #tpu.memory_space<vmem>>, vector<8x32xf32>,
    %c0_99 = arith.constant 0 : index
    %c0_100 = arith.constant 0 : index
    %255 = vector.load %arg9[%c0_99, %c0_100] : memref<64x32xf32, #tpu.memory_space<vmem>>, vector<64x32xf32>
    %c0_101 = arith.constant 0 : index
    %c0_102 = arith.constant 0 : index
    %256 = vector.load %arg5[%c0_101, %c0_102] : memref<1x32xf32, #tpu.memory_space<vmem>>, vector<1x32xf32>
    %257 = vector.broadcast %256 : vector<1x32xf32> to vector<64x32xf32>
    %258 = arith.mulf %255, %257 : vector<64x32xf32>
    %cst_103 = arith.constant dense<0.000000e+00> : vector<64xf32>
    %259 = vector.multi_reduction <add>, %258, %cst_103 [1] : vector<64x32xf32> to vector<64xf32>
    %260 = vector.shape_cast %259 : vector<64xf32> to vector<64x1xf32>
    %c0_104 = arith.constant 0 : index
    %c0_105 = arith.constant 0 : index
    %261 = vector.load %arg6[%c0_104, %c0_105] : memref<1x1xf32, #tpu.memory_space<vmem>>, vector<1x1xf32>
    %262 = vector.broadcast %261 : vector<1x1xf32> to vector<64x1xf32>
    %263 = arith.addf %260, %262 : vector<64x1xf32>
    %c0_106 = arith.constant 0 : index
    %c0_107 = arith.constant 0 : index
    %264 = vector.load %arg7[%c0_106, %c0_107] : memref<64x1xf32, #tpu.memory_space<vmem>>, vector<64x1xf32>
    tpu.vector_store %arg7[%c0_106, %c0_107], %263 {strides = array<i32>} : memref<64x1xf32, #tpu.memory_space<vmem>>, vector<64x1xf32>,
    return
  }
  func.func @transform_0(%arg0: i32) -> (i32, i32) {
    %c0_i32 = arith.constant 0 : i32
    %c0_i32_0 = arith.constant 0 : i32
    return %arg0, %c0_i32 : i32, i32
  }
  func.func @transform_1(%arg0: i32) -> (i32, i32) {
    %c0_i32 = arith.constant 0 : i32
    %c0_i32_0 = arith.constant 0 : i32
    %c0_i32_1 = arith.constant 0 : i32
    return %c0_i32, %c0_i32_0 : i32, i32
  }
  func.func @transform_2(%arg0: i32) -> (i32, i32) {
    %c0_i32 = arith.constant 0 : i32
    %c0_i32_0 = arith.constant 0 : i32
    %c0_i32_1 = arith.constant 0 : i32
    return %c0_i32, %c0_i32_0 : i32, i32
  }
  func.func @transform_3(%arg0: i32) -> (i32, i32) {
    %c0_i32 = arith.constant 0 : i32
    %c0_i32_0 = arith.constant 0 : i32
    %c0_i32_1 = arith.constant 0 : i32
    return %c0_i32, %c0_i32_0 : i32, i32
  }
  func.func @transform_4(%arg0: i32) -> (i32, i32) {
    %c0_i32 = arith.constant 0 : i32
    %c0_i32_0 = arith.constant 0 : i32
    %c0_i32_1 = arith.constant 0 : i32
    return %c0_i32, %c0_i32_0 : i32, i32
  }
  func.func @transform_5(%arg0: i32) -> (i32, i32) {
    %c0_i32 = arith.constant 0 : i32
    %c0_i32_0 = arith.constant 0 : i32
    %c0_i32_1 = arith.constant 0 : i32
    return %c0_i32, %c0_i32_0 : i32, i32
  }
  func.func @transform_6(%arg0: i32) -> (i32, i32) {
    %c0_i32 = arith.constant 0 : i32
    %c0_i32_0 = arith.constant 0 : i32
    return %arg0, %c0_i32 : i32, i32
  }
}

</mosaic_0001>

<bundles_post_ra>
// kernel: multi_lstm_forward.1
= control target key start
LH: loop header
LB: loop body
LE: loop exit
PB: predicated region body
PF: predicated region fallthrough
CT: control target
= control target key end

     0   :  { %vm49_vm0 = vcmask 130048   ;;  %v1349_v0 = vmov 0.0|0.0   ;;  %vm1350_vm1 = vmmov 0   ;;  %v1351_v4 = vmov 0.0   ;;  %s1352_s13 = smov 64   ;;  %s1353_s14 = smov 32   ;;  %s1618_s1 = inlined_call_operand.vmem [shape: f32[16,128], index: 1, kind: input, shape index: {}]   ;;  %s1619_s2 = inlined_call_operand.vmem [shape: f32[32,128], index: 2, kind: input, shape index: {}]   ;;  %s1620_s0 = inlined_call_operand.vmem [shape: f32[64,16], index: 0, kind: input, shape index: {}]   ;;  %s1621_s3 = inlined_call_operand.vmem [shape: f32[1,128], index: 3, kind: input, shape index: {}]   ;;  %s1622_s4 = inlined_call_operand.vmem [shape: f32[1,32], index: 4, kind: input, shape index: {}]   ;;  %s1623_s5 = inlined_call_operand.<no memory space> [shape: f32[1,1], index: 5, kind: input, shape index: {}]   ;;  %s1624_s6 = inlined_call_operand.vmem [shape: f32[64,1], index: 6, kind: output, shape index: {}]  }
   0x1   :  { %1263 = vmatprep.subr.bf16.mxu1 %v1349_v0  ;;  %v40_v1 = vld [vmem:[%s1618_s1] sm:$0xff]  ;;  %v41_v2 = vld [vmem:[%s1618_s1 + $0x8] sm:$0xff]  ;;  %1179 = vmatprep.mubr.msk.f32.mxu1 %vm1350_vm1, %v1351_v4  ;;  %vm29_vm2 = vcmask 261120   ;;  %v189_v9 = vld [vmem:[%s1619_s2 + $0x10] sm:$0xff]  ;;  %vm1073_vm3 = vcmask 7168   ;;  %s1354_s29 = smov 96  }
   0x2   :  { %v187_v3 = vld [vmem:[%s1619_s2] sm:$0xff]  ;;  %v1259_v5 = vpack.c.bf16 %v41_v2, %v40_v1  ;;  %v188_v6 = vld [vmem:[%s1619_s2 + $0x8] sm:$0xff]  ;;  %30 = vst.msk [vmem:[#allocation4] sm:$0xff] %vm29_vm2, %v1351_v4  ;;  %31 = vst.msk [vmem:[#allocation5] sm:$0xff] %vm29_vm2, %v1351_v4 }
   0x3   :  { %v32_v7 = vld [vmem:[%s1620_s0] sm:$0xff]  ;;  %v1412_v8 = vpack.c.bf16 %v188_v6, %v187_v3  ;;  %v190_v10 = vld [vmem:[%s1619_s2 + $0x18] sm:$0xff]  ;;  %v33_v11 = vld [vmem:[%s1620_s0 + $0x8] sm:$0xff] }
   0x4   :  { %1159 = vmatprep.mubr.msk.f32.mxu0 %vm49_vm0, %v32_v7  ;;  %1260 = vmatprep.subr.bf16.mxu0 %v1259_v5  ;;  %v1425_v12 = vpack.c.bf16 %v190_v10, %v189_v9  ;;  %v1446_v14 = vld [vmem:[%s1621_s3] ss:$0 sm:$0xff]  ;;  %v34_v47 = vld [vmem:[%s1620_s0 + $0x10] sm:$0xff]  ;;  %v35_v48 = vld [vmem:[%s1620_s0 + $0x18] sm:$0xff] }
   0x5   :  { %1265 = vmatpush3.bf16.msra.mxu1 %v1412_v8  ;;  %1262 = vmatpush3.bf16.msra.mxu0 %v1259_v5  ;;  %v36_v49 = vld [vmem:[%s1620_s0 + $0x20] sm:$0xff]  ;;  %v37_v50 = vld [vmem:[%s1620_s0 + $0x28] sm:$0xff]  ;;  %v38_v51 = vld [vmem:[%s1620_s0 + $0x30] sm:$0xff] }
   0x6   :  { %1266 = vmatprep.subr.bf16.mxu1 %v1349_v0  ;;  %1275 = vmatprep.subr.bf16.mxu0 %v1349_v0  ;;  %v39_v52 = vld [vmem:[%s1620_s0 + $0x38] sm:$0xff] }
   0x8   :  { %1160 = vmatmul.mubr.msk.f32.vlgmr.msra.gmra.mrb[0].mxu0 %vm49_vm0, %v33_v11 }
   0x9   :  { %1268 = vmatpush3.bf16.msra.mxu1 %v1425_v12  ;;  %v191_v13 = vld [vmem:[#allocation4] sm:$0xff]  ;;  %1277 = vmatpush3.bf16.msra.mxu0 %v1412_v8  ;;  %v192_v22 = vld [vmem:[#allocation5] sm:$0xff] }
   0xa   :  { %1269 = vmatprep.subr.bf16.mxu1 %v1349_v0  ;;  %1278 = vmatprep.subr.bf16.mxu0 %v1349_v0 }
   0xb   :  { %1162 = vmatprep.mubr.msk.f32.mxu0 %vm49_vm0, %v34_v47 }
   0xc   :  { %1180 = vmatmul.mubr.msk.f32.vlgmr.msra.gmra.mrb[0].mxu1 %vm29_vm2, %v191_v13  ;;  %1163 = vmatmul.mubr.msk.f32.gmra.mrb[2].mxu0 %vm49_vm0, %v35_v48 }
   0xd   :  { %1271 = vmatpush3.bf16.msra.mxu1 %v1412_v8  ;;  %1190 = vmatprep.mubr.msk.f32.mxu1 %vm1350_vm1, %v1351_v4 }
   0xe   :  { %1272 = vmatprep.subr.bf16.mxu1 %v1349_v0  ;;  %1280 = vmatpush3.bf16.msra.mxu0 %v1425_v12 }
   0xf   :  { %1287 = vmatprep.subr.bf16.mxu0 %v1349_v0  ;;  %1165 = vmatprep.mubr.msk.f32.mxu0 %vm49_vm0, %v36_v49 }
  0x10   :  { %1166 = vmatmul.mubr.msk.f32.gmra.mrb[4].mxu0 %vm49_vm0, %v37_v50 }
  0x11   :  { %1274 = vmatpush3.bf16.msra.mxu1 %v1425_v12  ;;  %1168 = vmatprep.mubr.msk.f32.mxu0 %vm49_vm0, %v38_v51 }
  0x12   :  { %1281 = vmatprep.subr.bf16.mxu1 %v1349_v0 }
  0x14   :  { %1169 = vmatmul.mubr.msk.f32.gmra.mrb[6].mxu0 %vm49_vm0, %v39_v52 }
  0x15   :  { %1201 = vmatprep.mubr.msk.f32.mxu0 %vm1350_vm1, %v1351_v4 }
  0xdb   :  { %v1161_v15 = vpop.f32.mrb[0].mxu0 }
  0xdc   :  { %v140_v16 = vpop.f32.mrb[1].mxu0  ;;  %v146_v35 = vadd.f32 %v1161_v15, %v1446_v14 }
  0xdd   :  { %v141_v17 = vadd.f32 %v1446_v14, %v140_v16 }
  0xdf   :  { %v264_v18 = vpop.f32.mrb[0].mxu1  ;;  %v1164_v56 = vpop.f32.mrb[2].mxu0 }
  0xe0   :  { %v268_v19 = vadd.f32 %v264_v18, %v141_v17  ;;  %v1181_v20 = vpop.f32.mrb[1].mxu1  ;;  %v150_v57 = vpop.f32.mrb[3].mxu0 }
  0xe1   :  { %v151_v63 = vadd.f32 %v1446_v14, %v150_v57  ;;  %v156_v20 = vadd.f32 %v1164_v56, %v1446_v14 }
  0xe2   :  { %1317 = vtanh.f32 %v268_v19 }
  0xe3   :  { %v1493_v58 = vpop.f32.mrb[4].mxu0 }
  0xe4   :  { %v1495_v59 = vpop.f32.mrb[5].mxu0  ;;  %v166_v52 = vadd.f32 %v1493_v58, %v1446_v14 }
  0xe7   :  { %v1497_v60 = vpop.f32.mrb[6].mxu0 }
  0xe8   :  { %v1499_v61 = vpop.f32.mrb[7].mxu0 }
  0xec   :  { %v1318_v21 = vpop.eup %1317 }
  0xed   :  { %278 = vrot.lane.b32.xlu0 %v1318_v21, %s1352_s13  ;;  %v270_v23 = vadd.f32 1.0, %v1318_v21 }
  0xef   :  { %v271_v24 = vmul.f32 0.5, %v270_v23 }
  0xf1   :  { %273 = vrot.lane.b32.xlu0 %v192_v22, %s1353_s14 }
 0x15f   :  { %v279_v25 = vpop.permute.xlu0 %278 }
 0x160   :  { %v281_v26 = vmul.f32 %v279_v25, %v271_v24 }
 0x162   :  { %283 = vrot.lane.b32.xlu1 %v281_v26, %s1353_s14 }
 0x163   :  { %v274_v27 = vpop.permute.xlu0 %273 }
 0x164   :  { %v276_v28 = vmul.f32 %v274_v27, %v271_v24 }
 0x1d4   :  { %v284_v29 = vpop.permute.xlu1 %283 }
 0x1d5   :  { %v286_v30 = vadd.f32 %v284_v29, %v276_v28 }
 0x1d7   :  { %1319 = vtanh.f32 %v286_v30 }
 0x1e1   :  { %v1320_v31 = vpop.eup %1319 }
 0x1e2   :  { %289 = vrot.lane.b32.xlu1 %v1320_v31, %s1352_s13 }
 0x254   :  { %v290_v32 = vpop.permute.xlu1 %289 }
 0x255   :  { %v292_v33 = vmul.f32 %v290_v32, %v271_v24 }
 0x257   :  { %294 = vrot.lane.b32.xlu0 %v292_v33, %s1353_s14 }
 0x2c9   :  { %v295_v34 = vpop.permute.xlu0 %294 }
 0x2ca   :  { %297 = vst.msk [vmem:[#allocation3] sm:$0xff] %vm29_vm2, %v295_v34  ;;  %1191 = vmatmul.mubr.msk.f32.vlgmr.msra.gmra.mrb[2].mxu1 %vm29_vm2, %v295_v34 }
 0x2cb   :  { %1283 = vmatpush3.bf16.msra.mxu1 %v1412_v8  ;;  %1212 = vmatprep.mubr.msk.f32.mxu1 %vm1350_vm1, %v1351_v4 }
 0x2cc   :  { %1284 = vmatprep.subr.bf16.mxu1 %v1349_v0 }
 0x2cf   :  { %1286 = vmatpush3.bf16.msra.mxu1 %v1425_v12 }
 0x2d0   :  { %1293 = vmatprep.subr.bf16.mxu1 %v1349_v0 }
 0x39d   :  { %v368_v36 = vpop.f32.mrb[2].mxu1 }
 0x39e   :  { %v372_v37 = vadd.f32 %v368_v36, %v146_v35  ;;  %v1192_v38 = vpop.f32.mrb[3].mxu1  ;;  %v161_v36 = vadd.f32 %v1446_v14, %v1495_v59 }
 0x3a0   :  { %1321 = vtanh.f32 %v372_v37 }
 0x3aa   :  { %v1322_v39 = vpop.eup %1321 }
 0x3ab   :  { %378 = vrot.lane.b32.xlu1 %v1322_v39, %s1352_s13  ;;  %v374_v40 = vadd.f32 1.0, %v1322_v39 }
 0x3ad   :  { %v375_v41 = vmul.f32 0.5, %v374_v40 }
 0x3af   :  { %v376_v44 = vmul.f32 %v375_v41, %v286_v30 }
 0x41d   :  { %v379_v42 = vpop.permute.xlu1 %378 }
 0x41e   :  { %v381_v43 = vmul.f32 %v379_v42, %v375_v41 }
 0x420   :  { %383 = vrot.lane.b32.xlu0 %v381_v43, %s1353_s14 }
 0x492   :  { %v384_v45 = vpop.permute.xlu0 %383 }
 0x493   :  { %v386_v46 = vadd.f32 %v384_v45, %v376_v44 }
 0x495   :  { %1323 = vtanh.f32 %v386_v46 }
 0x49f   :  { %v1324_v53 = vpop.eup %1323 }
 0x4a0   :  { %389 = vrot.lane.b32.xlu1 %v1324_v53, %s1352_s13 }
 0x512   :  { %v390_v54 = vpop.permute.xlu1 %389 }
 0x513   :  { %v392_v55 = vmul.f32 %v390_v54, %v375_v41 }
 0x515   :  { %394 = vrot.lane.b32.xlu0 %v392_v55, %s1353_s14 }
 0x587   :  { %v395_v62 = vpop.permute.xlu0 %394 }
 0x588   :  { %398 = vst.msk [vmem:[#allocation3 + $0x8] sm:$0xff] %vm29_vm2, %v395_v62  ;;  %1202 = vmatmul.mubr.msk.f32.vlgmr.msra.gmra.mrb[8].mxu0 %vm29_vm2, %v395_v62 }
 0x589   :  { %1289 = vmatpush3.bf16.msra.mxu0 %v1412_v8  ;;  %1223 = vmatprep.mubr.msk.f32.mxu0 %vm1350_vm1, %v1351_v4 }
 0x58a   :  { %1290 = vmatprep.subr.bf16.mxu0 %v1349_v0 }
 0x58d   :  { %1292 = vmatpush3.bf16.msra.mxu0 %v1425_v12 }
 0x58e   :  { %1299 = vmatprep.subr.bf16.mxu0 %v1349_v0 }
 0x65b   :  { %v469_v1 = vpop.f32.mrb[8].mxu0 }
 0x65c   :  { %v473_v2 = vadd.f32 %v469_v1, %v151_v63  ;;  %v1203_v3 = vpop.f32.mrb[9].mxu0 }
 0x65d   :  { %v171_v3 = vadd.f32 %v1446_v14, %v1499_v61 }
 0x65e   :  { %1325 = vtanh.f32 %v473_v2 }
 0x668   :  { %v1326_v5 = vpop.eup %1325 }
 0x669   :  { %479 = vrot.lane.b32.xlu1 %v1326_v5, %s1352_s13  ;;  %v475_v6 = vadd.f32 1.0, %v1326_v5 }
 0x66b   :  { %v476_v7 = vmul.f32 0.5, %v475_v6 }
 0x66d   :  { %v477_v11 = vmul.f32 %v476_v7, %v386_v46 }
 0x6db   :  { %v480_v9 = vpop.permute.xlu1 %479 }
 0x6dc   :  { %v482_v10 = vmul.f32 %v480_v9, %v476_v7 }
 0x6de   :  { %484 = vrot.lane.b32.xlu0 %v482_v10, %s1353_s14 }
 0x750   :  { %v485_v13 = vpop.permute.xlu0 %484 }
 0x751   :  { %v487_v15 = vadd.f32 %v485_v13, %v477_v11 }
 0x753   :  { %1327 = vtanh.f32 %v487_v15 }
 0x75d   :  { %v1328_v16 = vpop.eup %1327 }
 0x75e   :  { %490 = vrot.lane.b32.xlu1 %v1328_v16, %s1352_s13 }
 0x7d0   :  { %v491_v17 = vpop.permute.xlu1 %490 }
 0x7d1   :  { %v493_v18 = vmul.f32 %v491_v17, %v476_v7 }
 0x7d3   :  { %495 = vrot.lane.b32.xlu0 %v493_v18, %s1353_s14 }
 0x845   :  { %v496_v19 = vpop.permute.xlu0 %495 }
 0x846   :  { %499 = vst.msk [vmem:[#allocation3 + $0x10] sm:$0xff] %vm29_vm2, %v496_v19  ;;  %1213 = vmatmul.mubr.msk.f32.vlgmr.msra.gmra.mrb[4].mxu1 %vm29_vm2, %v496_v19 }
 0x847   :  { %1295 = vmatpush3.bf16.msra.mxu1 %v1412_v8  ;;  %1234 = vmatprep.mubr.msk.f32.mxu1 %vm1350_vm1, %v1351_v4 }
 0x848   :  { %1296 = vmatprep.subr.bf16.mxu1 %v1349_v0 }
 0x84b   :  { %1298 = vmatpush3.bf16.msra.mxu1 %v1425_v12 }
 0x84c   :  { %1305 = vmatprep.subr.bf16.mxu1 %v1349_v0 }
 0x919   :  { %v570_v21 = vpop.f32.mrb[4].mxu1 }
 0x91a   :  { %v574_v22 = vadd.f32 %v570_v21, %v156_v20  ;;  %v1214_v23 = vpop.f32.mrb[5].mxu1 }
 0x91c   :  { %1329 = vtanh.f32 %v574_v22  ;;  %v176_v22 = vadd.f32 %v1497_v60, %v1446_v14  ;;  %v1011_v14 = vld [vmem:[#allocation3] sm:$0xff] }
 0x91d   :  { %v1103_v60 = vld [vmem:[%s1622_s4] ss:$0 sm:$0xff] }
 0x926   :  { %v1330_v24 = vpop.eup %1329 }
 0x927   :  { %580 = vrot.lane.b32.xlu1 %v1330_v24, %s1352_s13  ;;  %v576_v25 = vadd.f32 1.0, %v1330_v24 }
 0x929   :  { %v577_v26 = vmul.f32 0.5, %v576_v25 }
 0x92b   :  { %v578_v29 = vmul.f32 %v577_v26, %v487_v15 }
 0x999   :  { %v581_v27 = vpop.permute.xlu1 %580 }
 0x99a   :  { %v583_v28 = vmul.f32 %v581_v27, %v577_v26 }
 0x99c   :  { %585 = vrot.lane.b32.xlu0 %v583_v28, %s1353_s14 }
 0xa0e   :  { %v586_v30 = vpop.permute.xlu0 %585 }
 0xa0f   :  { %v588_v31 = vadd.f32 %v586_v30, %v578_v29 }
 0xa11   :  { %1331 = vtanh.f32 %v588_v31 }
 0xa1b   :  { %v1332_v32 = vpop.eup %1331 }
 0xa1c   :  { %591 = vrot.lane.b32.xlu1 %v1332_v32, %s1352_s13 }
 0xa8e   :  { %v592_v33 = vpop.permute.xlu1 %591 }
 0xa8f   :  { %v594_v34 = vmul.f32 %v592_v33, %v577_v26 }
 0xa91   :  { %596 = vrot.lane.b32.xlu0 %v594_v34, %s1353_s14 }
 0xb03   :  { %v597_v35 = vpop.permute.xlu0 %596 }
 0xb04   :  { %600 = vst.msk [vmem:[#allocation3 + $0x18] sm:$0xff] %vm29_vm2, %v597_v35  ;;  %1224 = vmatmul.mubr.msk.f32.vlgmr.msra.gmra.mrb[10].mxu0 %vm29_vm2, %v597_v35  ;;  %v1026_v35 = vmul.f32 %v1103_v60, %v1011_v14 }
 0xb05   :  { %1301 = vmatpush3.bf16.msra.mxu0 %v1412_v8  ;;  %1245 = vmatprep.mubr.msk.f32.mxu0 %vm1350_vm1, %v1351_v4 }
 0xb06   :  { %1302 = vmatprep.subr.bf16.mxu0 %v1349_v0 }
 0xb09   :  { %1304 = vmatpush3.bf16.msra.mxu0 %v1425_v12 }
 0xbd7   :  { %v671_v37 = vpop.f32.mrb[10].mxu0 }
 0xbd8   :  { %v675_v38 = vadd.f32 %v671_v37, %v161_v36  ;;  %v1225_v39 = vpop.f32.mrb[11].mxu0  ;;  %v1014_v36 = vld [vmem:[#allocation3 + $0x18] sm:$0xff]  ;;  %v11_v37 = vstv %s1623_s5 }
 0xbd9   :  { %12 = vst [vmem:[#allocation6] sm:$0x1] %v11_v37  ;;  %v1029_v39 = vmul.f32 %v1103_v60, %v1014_v36 }
 0xbda   :  { %1333 = vtanh.f32 %v675_v38  ;;  %v1034_v38 = vsel %vm29_vm2, %v1026_v35, 0.0 }
 0xbe4   :  { %v1334_v40 = vpop.eup %1333 }
 0xbe5   :  { %681 = vrot.lane.b32.xlu1 %v1334_v40, %s1352_s13  ;;  %v677_v41 = vadd.f32 1.0, %v1334_v40 }
 0xbe7   :  { %v678_v42 = vmul.f32 0.5, %v677_v41  ;;  %v1043_v41 = vsel %vm29_vm2, %v1029_v39, 0.0 }
 0xbe9   :  { %v679_v45 = vmul.f32 %v678_v42, %v588_v31 }
 0xc57   :  { %v682_v43 = vpop.permute.xlu1 %681 }
 0xc58   :  { %v684_v44 = vmul.f32 %v682_v43, %v678_v42 }
 0xc5a   :  { %686 = vrot.lane.b32.xlu0 %v684_v44, %s1353_s14 }
 0xccc   :  { %v687_v46 = vpop.permute.xlu0 %686 }
 0xccd   :  { %v689_v47 = vadd.f32 %v687_v46, %v679_v45  ;;  %v1012_v46 = vld [vmem:[#allocation3 + $0x8] sm:$0xff] }
 0xccf   :  { %1335 = vtanh.f32 %v689_v47 }
 0xcd9   :  { %v1336_v48 = vpop.eup %1335 }
 0xcda   :  { %692 = vrot.lane.b32.xlu1 %v1336_v48, %s1352_s13  ;;  %v1013_v48 = vld [vmem:[#allocation3 + $0x10] sm:$0xff] }
 0xd4c   :  { %v693_v49 = vpop.permute.xlu1 %692 }
 0xd4d   :  { %v695_v50 = vmul.f32 %v693_v49, %v678_v42 }
 0xd4f   :  { %697 = vrot.lane.b32.xlu0 %v695_v50, %s1353_s14  ;;  %v1028_v50 = vmul.f32 %v1103_v60, %v1013_v48 }
 0xdc1   :  { %v698_v51 = vpop.permute.xlu0 %697 }
 0xdc2   :  { %701 = vst.msk [vmem:[#allocation3 + $0x20] sm:$0xff] %vm29_vm2, %v698_v51  ;;  %1235 = vmatmul.mubr.msk.f32.vlgmr.msra.gmra.mrb[6].mxu1 %vm29_vm2, %v698_v51 }
 0xdc3   :  { %1307 = vmatpush3.bf16.msra.mxu1 %v1412_v8  ;;  %1256 = vmatprep.mubr.msk.f32.mxu1 %vm1350_vm1, %v1351_v4 }
 0xdc4   :  { %1308 = vmatprep.subr.bf16.mxu1 %v1349_v0 }
 0xdc7   :  { %1310 = vmatpush3.bf16.msra.mxu1 %v1425_v12 }
 0xdc9   :  { %v1015_v51 = vld [vmem:[#allocation3 + $0x20] sm:$0xff] }
 0xe95   :  { %v772_v53 = vpop.f32.mrb[6].mxu1 }
 0xe96   :  { %v776_v54 = vadd.f32 %v772_v53, %v166_v52  ;;  %v1236_v55 = vpop.f32.mrb[7].mxu1  ;;  %v1040_v52 = vsel %vm29_vm2, %v1028_v50, 0.0  ;;  %v1030_v53 = vmul.f32 %v1103_v60, %v1015_v51 }
 0xe98   :  { %1337 = vtanh.f32 %v776_v54  ;;  %v1046_v55 = vsel %vm29_vm2, %v1030_v53, 0.0 }
 0xea2   :  { %v1338_v56 = vpop.eup %1337 }
 0xea3   :  { %782 = vrot.lane.b32.xlu1 %v1338_v56, %s1352_s13  ;;  %v778_v57 = vadd.f32 1.0, %v1338_v56 }
 0xea5   :  { %v779_v59 = vmul.f32 0.5, %v778_v57 }
 0xea7   :  { %v780_v4 = vmul.f32 %v779_v59, %v689_v47  ;;  %v1027_v47 = vmul.f32 %v1103_v60, %v1012_v46 }
 0xea9   :  { %v1037_v49 = vsel %vm29_vm2, %v1027_v47, 0.0 }
 0xf15   :  { %v783_v8 = vpop.permute.xlu1 %782 }
 0xf16   :  { %v785_v62 = vmul.f32 %v783_v8, %v779_v59 }
 0xf18   :  { %787 = vrot.lane.b32.xlu0 %v785_v62, %s1353_s14 }
 0xf8a   :  { %v788_v0 = vpop.permute.xlu0 %787 }
 0xf8b   :  { %v790_v63 = vadd.f32 %v788_v0, %v780_v4 }
 0xf8d   :  { %1339 = vtanh.f32 %v790_v63 }
 0xf97   :  { %v1340_v12 = vpop.eup %1339 }
 0xf98   :  { %793 = vrot.lane.b32.xlu1 %v1340_v12, %s1352_s13 }
0x100a   :  { %v794_v58 = vpop.permute.xlu1 %793 }
0x100b   :  { %v796_v1 = vmul.f32 %v794_v58, %v779_v59  ;;  %v1104_v59 = vld [vmem:[#allocation6] ss:$0 sm:$0xff] }
0x100d   :  { %798 = vrot.lane.b32.xlu0 %v796_v1, %s1353_s14 }
0x107f   :  { %v799_v2 = vpop.permute.xlu0 %798 }
0x1080   :  { %802 = vst.msk [vmem:[#allocation3 + $0x28] sm:$0xff] %vm29_vm2, %v799_v2  ;;  %1246 = vmatmul.mubr.msk.f32.vlgmr.msra.gmra.mrb[12].mxu0 %vm29_vm2, %v799_v2 }
0x1087   :  { %v1016_v40 = vld [vmem:[#allocation3 + $0x28] sm:$0xff] }
0x1088   :  { %v1031_v42 = vmul.f32 %v1103_v60, %v1016_v40 }
0x108a   :  { %v1049_v43 = vsel %vm29_vm2, %v1031_v42, 0.0 }
0x1153   :  { %v873_v5 = vpop.f32.mrb[12].mxu0 }
0x1154   :  { %v877_v6 = vadd.f32 %v873_v5, %v171_v3  ;;  %v1247_v7 = vpop.f32.mrb[13].mxu0 }
0x1156   :  { %1341 = vtanh.f32 %v877_v6 }
0x1160   :  { %v1342_v9 = vpop.eup %1341 }
0x1161   :  { %883 = vrot.lane.b32.xlu1 %v1342_v9, %s1352_s13  ;;  %v879_v10 = vadd.f32 1.0, %v1342_v9 }
0x1163   :  { %v880_v11 = vmul.f32 0.5, %v879_v10 }
0x1165   :  { %v881_v16 = vmul.f32 %v880_v11, %v790_v63 }
0x11d3   :  { %v884_v13 = vpop.permute.xlu1 %883 }
0x11d4   :  { %v886_v15 = vmul.f32 %v884_v13, %v880_v11 }
0x11d6   :  { %888 = vrot.lane.b32.xlu0 %v886_v15, %s1353_s14 }
0x1248   :  { %v889_v17 = vpop.permute.xlu0 %888 }
0x1249   :  { %v891_v18 = vadd.f32 %v889_v17, %v881_v16 }
0x124b   :  { %1343 = vtanh.f32 %v891_v18 }
0x1255   :  { %v1344_v19 = vpop.eup %1343 }
0x1256   :  { %894 = vrot.lane.b32.xlu1 %v1344_v19, %s1352_s13 }
0x12c8   :  { %v895_v61 = vpop.permute.xlu1 %894 }
0x12c9   :  { %v897_v20 = vmul.f32 %v895_v61, %v880_v11 }
0x12cb   :  { %899 = vrot.lane.b32.xlu0 %v897_v20, %s1353_s14 }
0x133d   :  { %v900_v21 = vpop.permute.xlu0 %899 }
0x133e   :  { %903 = vst.msk [vmem:[#allocation3 + $0x30] sm:$0xff] %vm29_vm2, %v900_v21  ;;  %1257 = vmatmul.mubr.msk.f32.vlgmr.msra.gmra.mrb[8].mxu1 %vm29_vm2, %v900_v21 }
0x1345   :  { %v1017_v54 = vld [vmem:[#allocation3 + $0x30] sm:$0xff] }
0x1346   :  { %v1032_v56 = vmul.f32 %v1103_v60, %v1017_v54 }
0x1348   :  { %v1052_v57 = vsel %vm29_vm2, %v1032_v56, 0.0 }
0x1411   :  { %v974_v23 = vpop.f32.mrb[8].mxu1 }
0x1412   :  { %v978_v24 = vadd.f32 %v974_v23, %v176_v22  ;;  %v1258_v25 = vpop.f32.mrb[9].mxu1 }
0x1414   :  { %1345 = vtanh.f32 %v978_v24 }
0x141e   :  { %v1346_v26 = vpop.eup %1345 }
0x141f   :  { %984 = vrot.lane.b32.xlu1 %v1346_v26, %s1352_s13  ;;  %v980_v27 = vadd.f32 1.0, %v1346_v26 }
0x1421   :  { %v981_v28 = vmul.f32 0.5, %v980_v27 }
0x1423   :  { %v982_v31 = vmul.f32 %v981_v28, %v891_v18 }
0x1491   :  { %v985_v29 = vpop.permute.xlu1 %984 }
0x1492   :  { %v987_v30 = vmul.f32 %v985_v29, %v981_v28 }
0x1494   :  { %989 = vrot.lane.b32.xlu0 %v987_v30, %s1353_s14 }
0x1506   :  { %v990_v32 = vpop.permute.xlu0 %989 }
0x1507   :  { %v992_v33 = vadd.f32 %v990_v32, %v982_v31 }
0x1509   :  { %1347 = vtanh.f32 %v992_v33 }
0x1513   :  { %v1348_v34 = vpop.eup %1347 }
0x1514   :  { %995 = vrot.lane.b32.xlu1 %v1348_v34, %s1352_s13 }
0x1538   :  { %1035 = vadd.xlane.f32.xlu1 %v1034_v38 }
0x153c   :  { %1044 = vadd.xlane.f32.xlu1 %v1043_v41 }
0x1540   :  { %1050 = vadd.xlane.f32.xlu1 %v1049_v43 }
0x1586   :  { %v996_v44 = vpop.permute.xlu1 %995 }
0x1587   :  { %v998_v45 = vmul.f32 %v996_v44, %v981_v28 }
0x1589   :  { %1000 = vrot.lane.b32.xlu0 %v998_v45, %s1353_s14 }
0x15a8   :  { %1038 = vadd.xlane.f32.xlu0 %v1037_v49 }
0x15ac   :  { %1041 = vadd.xlane.f32.xlu0 %v1040_v52 }
0x15b0   :  { %1047 = vadd.xlane.f32.xlu0 %v1046_v55 }
0x15b4   :  { %1053 = vadd.xlane.f32.xlu0 %v1052_v57 }
0x15c5   :  { %v1036_v8 = vpop.xlane.xlu1 %1035 }
0x15c6   :  { %v1065_v62 = vadd.f32 %v1104_v59, %v1036_v8 }
0x15c8   :  { %1074 = vst.msk [vmem:[%s1624_s6] sm:$0xff] %vm1073_vm3, %v1065_v62 }
0x15c9   :  { %v1045_v4 = vpop.xlane.xlu1 %1044 }
0x15ca   :  { %v1068_v0 = vadd.f32 %v1104_v59, %v1045_v4  ;;  %1007 = vrot.lane.b32.xlu0 %v992_v33, %s1354_s29 }
0x15cc   :  { %1077 = vst.msk [vmem:[%s1624_s6 + $0x18] sm:$0xff] %vm1073_vm3, %v1068_v0 }
0x15cd   :  { %v1051_v63 = vpop.xlane.xlu1 %1050 }
0x15ce   :  { %v1070_v12 = vadd.f32 %v1104_v59, %v1051_v63 }
0x15d0   :  { %1079 = vst.msk [vmem:[%s1624_s6 + $0x28] sm:$0xff] %vm1073_vm3, %v1070_v12 }
0x15fb   :  { %v1001_v58 = vpop.permute.xlu0 %1000 }
0x15fc   :  { %1004 = vst.msk [vmem:[#allocation3 + $0x38] sm:$0xff] %vm29_vm2, %v1001_v58  ;;  %1005 = vst.msk [vmem:[#allocation4] sm:$0xff] %vm29_vm2, %v1001_v58 }
0x1603   :  { %v1018_v1 = vld [vmem:[#allocation3 + $0x38] sm:$0xff] }
0x1604   :  { %v1033_v2 = vmul.f32 %v1103_v60, %v1018_v1 }
0x1606   :  { %v1055_v3 = vsel %vm29_vm2, %v1033_v2, 0.0 }
0x1607   :  { %1056 = vadd.xlane.f32.xlu1 %v1055_v3 }
0x1635   :  { %v1039_v5 = vpop.xlane.xlu0 %1038 }
0x1636   :  { %v1066_v6 = vadd.f32 %v1104_v59, %v1039_v5 }
0x1638   :  { %1075 = vst.msk [vmem:[%s1624_s6 + $0x8] sm:$0xff] %vm1073_vm3, %v1066_v6 }
0x1639   :  { %v1042_v7 = vpop.xlane.xlu0 %1041 }
0x163a   :  { %v1067_v9 = vadd.f32 %v1104_v59, %v1042_v7 }
0x163c   :  { %1076 = vst.msk [vmem:[%s1624_s6 + $0x10] sm:$0xff] %vm1073_vm3, %v1067_v9 }
0x163d   :  { %v1048_v10 = vpop.xlane.xlu0 %1047 }
0x163e   :  { %v1069_v11 = vadd.f32 %v1104_v59, %v1048_v10 }
0x1640   :  { %1078 = vst.msk [vmem:[%s1624_s6 + $0x20] sm:$0xff] %vm1073_vm3, %v1069_v11 }
0x1641   :  { %v1054_v13 = vpop.xlane.xlu0 %1053 }
0x1642   :  { %v1071_v15 = vadd.f32 %v1104_v59, %v1054_v13 }
0x1644   :  { %1080 = vst.msk [vmem:[%s1624_s6 + $0x30] sm:$0xff] %vm1073_vm3, %v1071_v15 }
0x1645   :  { %v1008_v16 = vpop.permute.xlu0 %1007 }
0x1646   :  { %1010 = vst.msk [vmem:[#allocation5] sm:$0xff] %vm29_vm2, %v1008_v16 }
0x1694   :  { %v1057_v17 = vpop.xlane.xlu1 %1056 }
0x1695   :  { %v1072_v18 = vadd.f32 %v1104_v59, %v1057_v17 }
0x1697   :  { %1081 = vst.msk [vmem:[%s1624_s6 + $0x38] sm:$0xff] %vm1073_vm3, %v1072_v18 }

</bundles_post_ra>
